<compile_context>
chip_gen: v7x
topology: tpu7x:2x2x1
jax: 0.10.0
libtpu: 0.0.40
codegen_flags: <defaults>
</compile_context>

<pallas_src>
import jax
import jax.numpy as jnp
from jax.experimental import pallas as pl
from jax.experimental.pallas import tpu as pltpu


def _round_up(n, m):
    return ((n + m - 1) // m) * m


# ----------------------------------------------------------------------------
# Pallas kernel: the whole MLP as a chain of full-tile GEMMs on one batch tile.
# ----------------------------------------------------------------------------
def _make_mlp_kernel(nlayers, compute_dtype):
    """Ref layout:
         x_ref (TB, obs_p)                          [compute_dtype]
         per hidden layer l: wT_l (in_p, H_p)       [compute_dtype], b_l (1, H_p) [f32]
         wmT (H_p, A_p) [compute_dtype], bm (1, A_p) [f32]   (scale/bias pre-folded)
         means_ref (TB, A_p)                        [f32 output]
    """

    def kernel(x_ref, *refs):
        means_ref = refs[-1]
        h = x_ref[...]                                        # (TB, in) compute dtype
        idx = 0
        for _ in range(nlayers):
            wT = refs[idx][...]                               # (in, H) compute dtype
            b = refs[idx + 1][...]                            # (1, H)  f32
            idx += 2
            # MXU in compute_dtype with f32 accumulate; bias add + tanh stay in f32.
            pre = jnp.dot(h, wT, preferred_element_type=jnp.float32) + b
            h = jnp.tanh(pre).astype(compute_dtype)           # (TB, H)
        wmT = refs[idx][...]                                  # (H, A) compute dtype
        bm = refs[idx + 1][...]                               # (1, A) f32
        means = jnp.dot(h, wmT, preferred_element_type=jnp.float32) + bm
        means_ref[...] = means.astype(means_ref.dtype)

    return kernel


# ----------------------------------------------------------------------------
# One-time weight preparation (do NOT call per forward step)
# ----------------------------------------------------------------------------
def prepare_params(params, *, acs_scale=1.0, acs_bias=0.0,
                   compute_dtype=jnp.bfloat16):
    """Transpose, pad to TPU-friendly shapes, cast weights to the MXU compute dtype and
    fold acs_scale / acs_bias (scalar or per-action vector) into the output projection.
    Call once (or whenever weights change) and reuse across forward() calls.
    Pass compute_dtype=jnp.float32 for exact f32 parity with the PyTorch module."""
    layers = params["layers"]
    nlayers = len(layers)
    acs_dim, nunits = params["w_mean"].shape
    obs_dim = layers[0][0].shape[1] if nlayers else nunits

    obs_p = _round_up(obs_dim, 8)          # sublane-aligned K for the first GEMM
    h_p = _round_up(nunits, 128)           # lane-dense hidden width
    a_p = _round_up(acs_dim, 128)          # lane-dense (unmasked) output stores

    acs_scale = jnp.asarray(acs_scale, jnp.float32)
    acs_bias = jnp.asarray(acs_bias, jnp.float32)

    def pad2(a, rows, cols):
        return jnp.pad(a, ((0, rows - a.shape[0]), (0, cols - a.shape[1])))

    inputs = []
    in_p = obs_p
    for (w, b) in layers:
        wT = jnp.transpose(w.astype(jnp.float32))                       # (in, H)
        inputs.append(pad2(wT, in_p, h_p).astype(compute_dtype))
        inputs.append(pad2(b.astype(jnp.float32).reshape(1, -1), 1, h_p))
        in_p = h_p

    # Output projection with acs_scale / acs_bias folded in (per-action broadcast).
    scale = jnp.broadcast_to(acs_scale, (acs_dim,))
    bias = jnp.broadcast_to(acs_bias, (acs_dim,))
    w_meanT = jnp.transpose(params["w_mean"].astype(jnp.float32)) * scale[None, :]
    b_mean = params["b_mean"].astype(jnp.float32) * scale + bias
    inputs.append(pad2(w_meanT, h_p, a_p).astype(compute_dtype))
    inputs.append(pad2(b_mean.reshape(1, -1), 1, a_p))

    return dict(
        inputs=tuple(inputs),
        nlayers=nlayers,
        obs_dim=obs_dim, obs_p=obs_p,
        acs_dim=acs_dim, a_p=a_p, h_p=h_p,
        compute_dtype=compute_dtype,
        log_stds=params["log_stds"].astype(jnp.float32),
    )


def _pick_tile_b(B, obs_p, h_p, a_p, weight_bytes, tile_b, vmem_budget=24 << 20):
    """Largest (<= requested, default 256) 8-aligned batch tile that keeps the
    double-buffered activation tiles + resident weights inside a conservative budget."""
    if tile_b is None:
        tile_b = 256
    tile_b = max(8, min(_round_up(tile_b, 8), _round_up(B, 8)))
    per_row = 2 * obs_p * 2 + 2 * a_p * 4 + 4 * h_p * 4
    while tile_b > 8 and weight_bytes + tile_b * per_row > vmem_budget:
        tile_b = max(8, _round_up(tile_b // 2, 8))
    return tile_b


# ----------------------------------------------------------------------------
# Forward wrapper (per-call work: pad x, launch the batch-tiled pallas_call)
# ----------------------------------------------------------------------------
def normal_mlp_forward(x, prepared, *, tile_b=None):
    """Returns (means, cov) — the parameters of the MultivariateNormal the PyTorch
    module would construct.  `prepared` comes from prepare_params()."""
    B, obs_dim = x.shape
    assert obs_dim == prepared["obs_dim"]
    obs_p, h_p, a_p = prepared["obs_p"], prepared["h_p"], prepared["a_p"]
    acs_dim = prepared["acs_dim"]
    nlayers = prepared["nlayers"]
    compute_dtype = prepared["compute_dtype"]
    weights = prepared["inputs"]

    weight_bytes = sum(int(w.size) * w.dtype.itemsize for w in weights)
    tile_b = _pick_tile_b(B, obs_p, h_p, a_p, weight_bytes, tile_b)
    b_pad = _round_up(max(B, tile_b), tile_b)
    grid = (b_pad // tile_b,)

    # Pad batch + obs dims; padded rows/cols are zeros (valid math, sliced off below).
    x_p = jnp.pad(x.astype(compute_dtype), ((0, b_pad - B), (0, obs_p - obs_dim)))

    flops = 2 * b_pad * (obs_p * h_p + max(nlayers - 1, 0) * h_p * h_p + h_p * a_p)
    cost = pl.CostEstimate(
        flops=int(flops),
        transcendentals=int(nlayers * b_pad * h_p),
        bytes_accessed=int(x_p.size * x_p.dtype.itemsize) + weight_bytes
        + int(b_pad * a_p * 4),
    )

    # VMEM budget: weights (2x headroom in case single-buffering is unavailable)
    # + double-buffered x/out tiles + f32 activation headroom.  Clamp to [32, 64] MiB.
    act_bytes = tile_b * (2 * obs_p * x_p.dtype.itemsize + 2 * a_p * 4 + 4 * h_p * 4)
    vmem_limit = int(min(max(2 * weight_bytes + act_bytes + (4 << 20), 32 << 20),
                         64 << 20))
    cparams = pltpu.CompilerParams(
        dimension_semantics=("parallel",),
        vmem_limit_bytes=vmem_limit,
    )

    kernel = _make_mlp_kernel(nlayers, compute_dtype)
    out_shape = jax.ShapeDtypeStruct((b_pad, a_p), jnp.float32)
    out_spec = pl.BlockSpec((tile_b, a_p), lambda i: (i, 0))

    def build_in_specs(single_buffer_weights):
        specs = [pl.BlockSpec((tile_b, obs_p), lambda i: (i, 0))]
        for w in weights:
            if single_buffer_weights:
                # Grid-invariant blocks: one buffer is enough, halves weight VMEM.
                specs.append(pl.BlockSpec(w.shape, lambda i: (0, 0),
                                          pipeline_mode=pl.Buffered(1)))
            else:
                specs.append(pl.BlockSpec(w.shape, lambda i: (0, 0)))
        return specs

    def run(single_buffer_weights):
        return pl.pallas_call(
            kernel,
            out_shape=out_shape,
            grid=grid,
            in_specs=build_in_specs(single_buffer_weights),
            out_specs=out_spec,
            compiler_params=cparams,
            cost_estimate=cost,
        )(x_p, *weights)

    try:
        means_p = run(single_buffer_weights=True)
    except Exception:
        # TODO(synk): some Pallas versions reject pl.Buffered(1); retry with the
        # default double-buffered weight blocks (correctness identical).
        means_p = run(single_buffer_weights=False)

    means = means_p[:B, :acs_dim]

    # TODO(synk): MultivariateNormal itself is not expressible in Pallas; return
    # (means, cov) with cov = diag(exp(log_stds)) exactly as the module builds it.
    cov = jnp.diag(jnp.exp(prepared["log_stds"]))
    return means, cov


# ----------------------------------------------------------------------------
# Pure-JAX reference (mirrors the PyTorch forward exactly) for validation
# ----------------------------------------------------------------------------
def reference_forward(x, params, acs_scale=1.0, acs_bias=0.0):
    h = x.astype(jnp.float32)
    for (w, b) in params["layers"]:
        h = jnp.tanh(h @ w.T + b)
    means = h @ params["w_mean"].T + params["b_mean"]
    return (means * jnp.asarray(acs_scale, jnp.float32)
            + jnp.asarray(acs_bias, jnp.float32))


# ----------------------------------------------------------------------------
# Deterministic PyTorch-like parameter init: uniform(-1/sqrt(fan_in), 1/sqrt(fan_in))
# ----------------------------------------------------------------------------
def init_params(key, obs_dim, acs_dim, nlayers, nunits, init_log_std=0.0):
    def u(key, shape, fan_in):
        bound = 1.0 / jnp.sqrt(jnp.float32(fan_in))
        return jax.random.uniform(key, shape, jnp.float32, -bound, bound)

    keys = iter(jax.random.split(key, 2 * nlayers + 2))
    layers = []
    in_size = obs_dim
    for _ in range(nlayers):
        w = u(next(keys), (nunits, in_size), in_size)
        b = u(next(keys), (nunits,), in_size)
        layers.append((w, b))
        in_size = nunits
    w_mean = u(next(keys), (acs_dim, nunits), nunits)
    b_mean = u(next(keys), (acs_dim,), nunits)
    return dict(
        layers=layers,
        w_mean=w_mean,
        b_mean=b_mean,
        log_stds=jnp.ones((acs_dim,), jnp.float32) * init_log_std,
    )


if __name__ == "__main__":
    # Small shapes consistent with the module's forward: x is (batch, obs_dim).
    obs_dim, acs_dim = 4, 3
    nlayers, nunits = 2, 32
    batch = 2
    # Per-action scale / bias (exercises the vector acs_scale / acs_bias path).
    acs_scale = jnp.array([1.5, 0.5, 2.0], jnp.float32)
    acs_bias = jnp.array([0.25, -0.1, 0.0], jnp.float32)

    key = jax.random.PRNGKey(0)
    k_x, k_p, k_x2 = jax.random.split(key, 3)
    x = jax.random.normal(k_x, (batch, obs_dim), jnp.float32)
    params = init_params(k_p, obs_dim, acs_dim, nlayers, nunits, init_log_std=0.0)

    # One-time weight prep (transpose / pad / bf16 cast / scale-bias folding).
    prepared = prepare_params(params, acs_scale=acs_scale, acs_bias=acs_bias)

    # ---- tiny batch (single grid step) ----
    means, cov = normal_mlp_forward(x, prepared)
    means = jax.block_until_ready(means)
    cov = jax.block_until_ready(cov)
    means_ref = reference_forward(x, params, acs_scale, acs_bias)
    assert means.shape == (batch, acs_dim)
    assert cov.shape == (acs_dim, acs_dim)
    # bf16 MXU operands -> looser tolerance vs. the f32 reference (expected, not a bug).
    assert jnp.allclose(means, means_ref, atol=3e-2, rtol=3e-2), (means, means_ref)
    assert jnp.allclose(cov, jnp.diag(jnp.exp(params["log_stds"])))

    # ---- larger, non-tile-divisible batch: padded, multi-step "parallel" grid ----
    big_batch = 300
    x2 = jax.random.normal(k_x2, (big_batch, obs_dim), jnp.float32)
    means2, _ = normal_mlp_forward(x2, prepared, tile_b=256)
    means2 = jax.block_until_ready(means2)
    means2_ref = reference_forward(x2, params, acs_scale, acs_bias)
    assert means2.shape == (big_batch, acs_dim)
    assert jnp.allclose(means2, means2_ref, atol=3e-2, rtol=3e-2)

    print("KERNEL_OK")
</pallas_src>

<mosaic_0001>
module attributes {stable_mosaic.version = 11 : i64} {
  func.func @kernel(%arg0: i32, %arg1: memref<8x8xbf16, #tpu.memory_space<vmem>>, %arg2: memref<8x128xbf16, #tpu.memory_space<vmem>>, %arg3: memref<1x128xf32, #tpu.memory_space<vmem>>, %arg4: memref<128x128xbf16, #tpu.memory_space<vmem>>, %arg5: memref<1x128xf32, #tpu.memory_space<vmem>>, %arg6: memref<128x128xbf16, #tpu.memory_space<vmem>>, %arg7: memref<1x128xf32, #tpu.memory_space<vmem>>, %arg8: memref<8x128xf32, #tpu.memory_space<vmem>>) attributes {dimension_semantics = [#tpu.dimension_semantics<parallel>], iteration_bounds = array<i64: 1>, scalar_prefetch = 0 : i64, scratch_operands = 0 : i64, tpu.core_type = #tpu.core_type<tc>, window_params = [{transform_indices = @transform_0, window_bounds = array<i64: 8, 8>}, {pipeline_mode = #tpu.pipeline_mode<synchronous>, transform_indices = @transform_1, window_bounds = array<i64: 8, 128>}, {pipeline_mode = #tpu.pipeline_mode<synchronous>, transform_indices = @transform_2, window_bounds = array<i64: 1, 128>}, {pipeline_mode = #tpu.pipeline_mode<synchronous>, transform_indices = @transform_3, window_bounds = array<i64: 128, 128>}, {pipeline_mode = #tpu.pipeline_mode<synchronous>, transform_indices = @transform_4, window_bounds = array<i64: 1, 128>}, {pipeline_mode = #tpu.pipeline_mode<synchronous>, transform_indices = @transform_5, window_bounds = array<i64: 128, 128>}, {pipeline_mode = #tpu.pipeline_mode<synchronous>, transform_indices = @transform_6, window_bounds = array<i64: 1, 128>}, {transform_indices = @transform_7, window_bounds = array<i64: 8, 128>}]} {
    %c0 = arith.constant 0 : index
    %c0_0 = arith.constant 0 : index
    %0 = vector.load %arg1[%c0, %c0_0] : memref<8x8xbf16, #tpu.memory_space<vmem>>, vector<8x8xbf16>
    %c0_1 = arith.constant 0 : index
    %c0_2 = arith.constant 0 : index
    %1 = vector.load %arg2[%c0_1, %c0_2] : memref<8x128xbf16, #tpu.memory_space<vmem>>, vector<8x128xbf16>
    %c0_3 = arith.constant 0 : index
    %c0_4 = arith.constant 0 : index
    %2 = vector.load %arg3[%c0_3, %c0_4] : memref<1x128xf32, #tpu.memory_space<vmem>>, vector<1x128xf32>
    %cst = arith.constant dense<0.000000e+00> : vector<8x128xf32>
    %3 = tpu.matmul %0, %1, %cst {dimension_numbers = #tpu.dot_dimension_numbers<[1], [0], [0], [1], [0, 0, 1, 1], [], []>} : vector<8x8xbf16>, vector<8x128xbf16>, vector<8x128xf32> -> vector<8x128xf32>
    %4 = vector.broadcast %2 : vector<1x128xf32> to vector<8x128xf32>
    %5 = arith.addf %3, %4 : vector<8x128xf32>
    %6 = math.tanh %5 : vector<8x128xf32>
    %7 = arith.truncf %6 : vector<8x128xf32> to vector<8x128xbf16>
    %c0_5 = arith.constant 0 : index
    %c0_6 = arith.constant 0 : index
    %8 = vector.load %arg4[%c0_5, %c0_6] : memref<128x128xbf16, #tpu.memory_space<vmem>>, vector<128x128xbf16>
    %c0_7 = arith.constant 0 : index
    %c0_8 = arith.constant 0 : index
    %9 = vector.load %arg5[%c0_7, %c0_8] : memref<1x128xf32, #tpu.memory_space<vmem>>, vector<1x128xf32>
    %cst_9 = arith.constant dense<0.000000e+00> : vector<8x128xf32>
    %10 = tpu.matmul %7, %8, %cst_9 {dimension_numbers = #tpu.dot_dimension_numbers<[1], [0], [0], [1], [0, 0, 1, 1], [], []>} : vector<8x128xbf16>, vector<128x128xbf16>, vector<8x128xf32> -> vector<8x128xf32>
    %11 = vector.broadcast %9 : vector<1x128xf32> to vector<8x128xf32>
    %12 = arith.addf %10, %11 : vector<8x128xf32>
    %13 = math.tanh %12 : vector<8x128xf32>
    %14 = arith.truncf %13 : vector<8x128xf32> to vector<8x128xbf16>
    %c0_10 = arith.constant 0 : index
    %c0_11 = arith.constant 0 : index
    %15 = vector.load %arg6[%c0_10, %c0_11] : memref<128x128xbf16, #tpu.memory_space<vmem>>, vector<128x128xbf16>
    %c0_12 = arith.constant 0 : index
    %c0_13 = arith.constant 0 : index
    %16 = vector.load %arg7[%c0_12, %c0_13] : memref<1x128xf32, #tpu.memory_space<vmem>>, vector<1x128xf32>
    %cst_14 = arith.constant dense<0.000000e+00> : vector<8x128xf32>
    %17 = tpu.matmul %14, %15, %cst_14 {dimension_numbers = #tpu.dot_dimension_numbers<[1], [0], [0], [1], [0, 0, 1, 1], [], []>} : vector<8x128xbf16>, vector<128x128xbf16>, vector<8x128xf32> -> vector<8x128xf32>
    %18 = vector.broadcast %16 : vector<1x128xf32> to vector<8x128xf32>
    %19 = arith.addf %17, %18 : vector<8x128xf32>
    %c0_15 = arith.constant 0 : index
    %c0_16 = arith.constant 0 : index
    %20 = vector.load %arg8[%c0_15, %c0_16] : memref<8x128xf32, #tpu.memory_space<vmem>>, vector<8x128xf32>
    tpu.vector_store %arg8[%c0_15, %c0_16], %19 {strides = array<i32>} : memref<8x128xf32, #tpu.memory_space<vmem>>, vector<8x128xf32>,
    return
  }
  func.func @transform_0(%arg0: i32) -> (i32, i32) {
    %c0_i32 = arith.constant 0 : i32
    %c0_i32_0 = arith.constant 0 : i32
    return %arg0, %c0_i32 : i32, i32
  }
  func.func @transform_1(%arg0: i32) -> (i32, i32) {
    %c0_i32 = arith.constant 0 : i32
    %c0_i32_0 = arith.constant 0 : i32
    %c0_i32_1 = arith.constant 0 : i32
    return %c0_i32, %c0_i32_0 : i32, i32
  }
  func.func @transform_2(%arg0: i32) -> (i32, i32) {
    %c0_i32 = arith.constant 0 : i32
    %c0_i32_0 = arith.constant 0 : i32
    %c0_i32_1 = arith.constant 0 : i32
    return %c0_i32, %c0_i32_0 : i32, i32
  }
  func.func @transform_3(%arg0: i32) -> (i32, i32) {
    %c0_i32 = arith.constant 0 : i32
    %c0_i32_0 = arith.constant 0 : i32
    %c0_i32_1 = arith.constant 0 : i32
    return %c0_i32, %c0_i32_0 : i32, i32
  }
  func.func @transform_4(%arg0: i32) -> (i32, i32) {
    %c0_i32 = arith.constant 0 : i32
    %c0_i32_0 = arith.constant 0 : i32
    %c0_i32_1 = arith.constant 0 : i32
    return %c0_i32, %c0_i32_0 : i32, i32
  }
  func.func @transform_5(%arg0: i32) -> (i32, i32) {
    %c0_i32 = arith.constant 0 : i32
    %c0_i32_0 = arith.constant 0 : i32
    %c0_i32_1 = arith.constant 0 : i32
    return %c0_i32, %c0_i32_0 : i32, i32
  }
  func.func @transform_6(%arg0: i32) -> (i32, i32) {
    %c0_i32 = arith.constant 0 : i32
    %c0_i32_0 = arith.constant 0 : i32
    %c0_i32_1 = arith.constant 0 : i32
    return %c0_i32, %c0_i32_0 : i32, i32
  }
  func.func @transform_7(%arg0: i32) -> (i32, i32) {
    %c0_i32 = arith.constant 0 : i32
    %c0_i32_0 = arith.constant 0 : i32
    return %arg0, %c0_i32 : i32, i32
  }
}

module attributes {stable_mosaic.version = 11 : i64} {
  func.func @kernel(%arg0: i32, %arg1: memref<8x8xbf16, #tpu.memory_space<vmem>>, %arg2: memref<8x128xbf16, #tpu.memory_space<vmem>>, %arg3: memref<1x128xf32, #tpu.memory_space<vmem>>, %arg4: memref<128x128xbf16, #tpu.memory_space<vmem>>, %arg5: memref<1x128xf32, #tpu.memory_space<vmem>>, %arg6: memref<128x128xbf16, #tpu.memory_space<vmem>>, %arg7: memref<1x128xf32, #tpu.memory_space<vmem>>, %arg8: memref<8x128xf32, #tpu.memory_space<vmem>>) attributes {dimension_semantics = [#tpu.dimension_semantics<parallel>], iteration_bounds = array<i64: 1>, scalar_prefetch = 0 : i64, scratch_operands = 0 : i64, tpu.core_type = #tpu.core_type<tc>, window_params = [{transform_indices = @transform_0, window_bounds = array<i64: 8, 8>}, {pipeline_mode = #tpu.pipeline_mode<synchronous>, transform_indices = @transform_1, window_bounds = array<i64: 8, 128>}, {pipeline_mode = #tpu.pipeline_mode<synchronous>, transform_indices = @transform_2, window_bounds = array<i64: 1, 128>}, {pipeline_mode = #tpu.pipeline_mode<synchronous>, transform_indices = @transform_3, window_bounds = array<i64: 128, 128>}, {pipeline_mode = #tpu.pipeline_mode<synchronous>, transform_indices = @transform_4, window_bounds = array<i64: 1, 128>}, {pipeline_mode = #tpu.pipeline_mode<synchronous>, transform_indices = @transform_5, window_bounds = array<i64: 128, 128>}, {pipeline_mode = #tpu.pipeline_mode<synchronous>, transform_indices = @transform_6, window_bounds = array<i64: 1, 128>}, {transform_indices = @transform_7, window_bounds = array<i64: 8, 128>}]} {
    %c0 = arith.constant 0 : index
    %c0_0 = arith.constant 0 : index
    %0 = vector.load %arg1[%c0, %c0_0] : memref<8x8xbf16, #tpu.memory_space<vmem>>, vector<8x8xbf16>
    %c0_1 = arith.constant 0 : index
    %c0_2 = arith.constant 0 : index
    %1 = vector.load %arg2[%c0_1, %c0_2] : memref<8x128xbf16, #tpu.memory_space<vmem>>, vector<8x128xbf16>
    %c0_3 = arith.constant 0 : index
    %c0_4 = arith.constant 0 : index
    %2 = vector.load %arg3[%c0_3, %c0_4] : memref<1x128xf32, #tpu.memory_space<vmem>>, vector<1x128xf32>
    %cst = arith.constant dense<0.000000e+00> : vector<8x128xf32>
    %3 = tpu.matmul %0, %1, %cst {dimension_numbers = #tpu.dot_dimension_numbers<[1], [0], [0], [1], [0, 0, 1, 1], [], []>} : vector<8x8xbf16>, vector<8x128xbf16>, vector<8x128xf32> -> vector<8x128xf32>
    %4 = vector.broadcast %2 : vector<1x128xf32> to vector<8x128xf32>
    %5 = arith.addf %3, %4 : vector<8x128xf32>
    %6 = math.tanh %5 : vector<8x128xf32>
    %7 = arith.truncf %6 : vector<8x128xf32> to vector<8x128xbf16>
    %c0_5 = arith.constant 0 : index
    %c0_6 = arith.constant 0 : index
    %8 = vector.load %arg4[%c0_5, %c0_6] : memref<128x128xbf16, #tpu.memory_space<vmem>>, vector<128x128xbf16>
    %c0_7 = arith.constant 0 : index
    %c0_8 = arith.constant 0 : index
    %9 = vector.load %arg5[%c0_7, %c0_8] : memref<1x128xf32, #tpu.memory_space<vmem>>, vector<1x128xf32>
    %cst_9 = arith.constant dense<0.000000e+00> : vector<8x128xf32>
    %10 = tpu.matmul %7, %8, %cst_9 {dimension_numbers = #tpu.dot_dimension_numbers<[1], [0], [0], [1], [0, 0, 1, 1], [], []>} : vector<8x128xbf16>, vector<128x128xbf16>, vector<8x128xf32> -> vector<8x128xf32>
    %11 = vector.broadcast %9 : vector<1x128xf32> to vector<8x128xf32>
    %12 = arith.addf %10, %11 : vector<8x128xf32>
    %13 = math.tanh %12 : vector<8x128xf32>
    %14 = arith.truncf %13 : vector<8x128xf32> to vector<8x128xbf16>
    %c0_10 = arith.constant 0 : index
    %c0_11 = arith.constant 0 : index
    %15 = vector.load %arg6[%c0_10, %c0_11] : memref<128x128xbf16, #tpu.memory_space<vmem>>, vector<128x128xbf16>
    %c0_12 = arith.constant 0 : index
    %c0_13 = arith.constant 0 : index
    %16 = vector.load %arg7[%c0_12, %c0_13] : memref<1x128xf32, #tpu.memory_space<vmem>>, vector<1x128xf32>
    %cst_14 = arith.constant dense<0.000000e+00> : vector<8x128xf32>
    %17 = tpu.matmul %14, %15, %cst_14 {dimension_numbers = #tpu.dot_dimension_numbers<[1], [0], [0], [1], [0, 0, 1, 1], [], []>} : vector<8x128xbf16>, vector<128x128xbf16>, vector<8x128xf32> -> vector<8x128xf32>
    %18 = vector.broadcast %16 : vector<1x128xf32> to vector<8x128xf32>
    %19 = arith.addf %17, %18 : vector<8x128xf32>
    %c0_15 = arith.constant 0 : index
    %c0_16 = arith.constant 0 : index
    %20 = vector.load %arg8[%c0_15, %c0_16] : memref<8x128xf32, #tpu.memory_space<vmem>>, vector<8x128xf32>
    tpu.vector_store %arg8[%c0_15, %c0_16], %19 {strides = array<i32>} : memref<8x128xf32, #tpu.memory_space<vmem>>, vector<8x128xf32>,
    return
  }
  func.func @transform_0(%arg0: i32) -> (i32, i32) {
    %c0_i32 = arith.constant 0 : i32
    %c0_i32_0 = arith.constant 0 : i32
    return %arg0, %c0_i32 : i32, i32
  }
  func.func @transform_1(%arg0: i32) -> (i32, i32) {
    %c0_i32 = arith.constant 0 : i32
    %c0_i32_0 = arith.constant 0 : i32
    %c0_i32_1 = arith.constant 0 : i32
    return %c0_i32, %c0_i32_0 : i32, i32
  }
  func.func @transform_2(%arg0: i32) -> (i32, i32) {
    %c0_i32 = arith.constant 0 : i32
    %c0_i32_0 = arith.constant 0 : i32
    %c0_i32_1 = arith.constant 0 : i32
    return %c0_i32, %c0_i32_0 : i32, i32
  }
  func.func @transform_3(%arg0: i32) -> (i32, i32) {
    %c0_i32 = arith.constant 0 : i32
    %c0_i32_0 = arith.constant 0 : i32
    %c0_i32_1 = arith.constant 0 : i32
    return %c0_i32, %c0_i32_0 : i32, i32
  }
  func.func @transform_4(%arg0: i32) -> (i32, i32) {
    %c0_i32 = arith.constant 0 : i32
    %c0_i32_0 = arith.constant 0 : i32
    %c0_i32_1 = arith.constant 0 : i32
    return %c0_i32, %c0_i32_0 : i32, i32
  }
  func.func @transform_5(%arg0: i32) -> (i32, i32) {
    %c0_i32 = arith.constant 0 : i32
    %c0_i32_0 = arith.constant 0 : i32
    %c0_i32_1 = arith.constant 0 : i32
    return %c0_i32, %c0_i32_0 : i32, i32
  }
  func.func @transform_6(%arg0: i32) -> (i32, i32) {
    %c0_i32 = arith.constant 0 : i32
    %c0_i32_0 = arith.constant 0 : i32
    %c0_i32_1 = arith.constant 0 : i32
    return %c0_i32, %c0_i32_0 : i32, i32
  }
  func.func @transform_7(%arg0: i32) -> (i32, i32) {
    %c0_i32 = arith.constant 0 : i32
    %c0_i32_0 = arith.constant 0 : i32
    return %arg0, %c0_i32 : i32, i32
  }
}

</mosaic_0001>

<bundles_post_ra>
// kernel: tpu_custom_call.1
= control target key start
LH: loop header
LB: loop body
LE: loop exit
PB: predicated region body
PF: predicated region fallthrough
CT: control target
= control target key end

     0   :  { %12 = vsyncpa [#allocation3], 0  ;;  %s754_s0 = inlined_call_operand.hbm [shape: bf16[8,8], index: 0, kind: input, shape index: {}]   ;;  %s755_s1 = inlined_call_operand.hbm [shape: bf16[8,128], index: 1, kind: input, shape index: {}]   ;;  %s756_s2 = inlined_call_operand.vmem [shape: f32[1,128], index: 2, kind: input, shape index: {}]   ;;  %s757_s3 = inlined_call_operand.hbm [shape: bf16[128,128], index: 3, kind: input, shape index: {}]   ;;  %s758_s4 = inlined_call_operand.vmem [shape: f32[1,128], index: 4, kind: input, shape index: {}]   ;;  %s759_s5 = inlined_call_operand.hbm [shape: bf16[128,128], index: 5, kind: input, shape index: {}]   ;;  %s760_s6 = inlined_call_operand.vmem [shape: f32[1,128], index: 6, kind: input, shape index: {}]   ;;  %s761_s7 = inlined_call_operand.hbm [shape: f32[8,128], index: 7, kind: output, shape index: {}]  }
   0x1   :  { %13 = vsyncpa [#allocation6], 0 }
   0x2   :  { %14 = vsyncpa [#allocation9], 0 }
   0x3   :  { %15 = vsyncpa [#allocation4], 0  ;;  %s613_s24 = smov [#allocation5]   ;;  %s614_s26 = smov [#allocation2]  }
   0x4   :  { %s32_s25 = sshll.u32 %s613_s24, 4  ;;  %s22_s27 = sshll.u32 %s614_s26, 4  ;;  %s33_s25 = int_to_ptr.vmem [resolvable:$true] %s32_s25  ;;  %s23_s27 = int_to_ptr.vmem [resolvable:$true] %s22_s27 }
   0x5   :  { %s495_s30 = scalar_lea.hbm %s755_s1, 64 }
   0x6   :  { %p496_p0 = scmp.ne.s32.totalorder %s755_s1, %s495_s30  ;;  %p499_p1 = scmp.lt.u32.totalorder %s495_s30, %s755_s1 }
   0x8   :  { %p501_p2 = pnand %p499_p1, %p496_p0 }
   0xa   :  { %504 = shalt.err (!%p501_p2)
}
   0xb   :  { %s505_s12 = scalar_lea.vmem %s33_s25, 64  ;;  %p510_p4 = scmp.lt.s32.totalorder %s33_s25, %s33_s25 }
   0xc   :  { %p506_p3 = scmp.ne.s32.totalorder %s33_s25, %s505_s12  ;;  %p511_p5 = scmp.lt.s32.totalorder %s505_s12, %s505_s12 }
   0xe   :  { %p512_p6 = por %p511_p5, %p510_p4 }
  0x10   :  { %p513_p7 = pnand %p512_p6, %p506_p3 }
  0x12   :  { %516 = shalt.err (!%p513_p7)
}
  0x13   :  { %35 = dma.hbm_to_vmem [thread:$0]  %s755_s1, 64, %s33_s25, [#allocation6]  }
  0x14   :  { %s517_s17 = scalar_lea.hbm %s754_s0, 64 }
  0x15   :  { %p518_p8 = scmp.ne.s32.totalorder %s754_s0, %s517_s17  ;;  %p521_p9 = scmp.lt.u32.totalorder %s517_s17, %s754_s0 }
  0x17   :  { %p523_p10 = pnand %p521_p9, %p518_p8 }
  0x19   :  { %526 = shalt.err (!%p523_p10)
}
  0x1a   :  { %s527_s22 = scalar_lea.vmem %s23_s27, 64  ;;  %p532_p12 = scmp.lt.s32.totalorder %s23_s27, %s23_s27 }
  0x1b   :  { %p528_p11 = scmp.ne.s32.totalorder %s23_s27, %s527_s22  ;;  %p533_p13 = scmp.lt.s32.totalorder %s527_s22, %s527_s22 }
  0x1d   :  { %p534_p0 = por %p533_p13, %p532_p12 }
  0x1f   :  { %p535_p1 = pnand %p534_p0, %p528_p11 }
  0x21   :  { %538 = shalt.err (!%p535_p1)
}
  0x22   :  { %25 = dma.hbm_to_vmem [thread:$0]  %s754_s0, 64, %s23_s27, [#allocation3]  }
  0x23   :  { %s615_s24 = smov [#allocation7]   ;;  %s539_s29 = scalar_lea.hbm %s757_s3, 1024 }
  0x24   :  { %s43_s25 = sshll.u32 %s615_s24, 4  ;;  %p540_p2 = scmp.ne.s32.totalorder %s757_s3, %s539_s29  ;;  %s44_s25 = int_to_ptr.vmem [resolvable:$true] %s43_s25 }
  0x25   :  { %p543_p3 = scmp.lt.u32.totalorder %s539_s29, %s757_s3 }
  0x27   :  { %p545_p4 = pnand %p543_p3, %p540_p2 }
  0x29   :  { %548 = shalt.err (!%p545_p4)
}
  0x2a   :  { %s549_s11 = scalar_lea.vmem %s44_s25, 1024  ;;  %p554_p6 = scmp.lt.s32.totalorder %s44_s25, %s44_s25 }
  0x2b   :  { %p550_p5 = scmp.ne.s32.totalorder %s44_s25, %s549_s11  ;;  %p555_p7 = scmp.lt.s32.totalorder %s549_s11, %s549_s11 }
  0x2d   :  { %p556_p8 = por %p555_p7, %p554_p6 }
  0x2f   :  { %p557_p9 = pnand %p556_p8, %p550_p5 }
  0x31   :  { %560 = shalt.err (!%p557_p9)
}
  0x32   :  { %s616_s0 = smov 64   ;;  %s617_s27 = smov 4  }
  0x33   :  { %49 = dma.hbm_to_vmem [thread:$0]  %s757_s3, 1024, %s44_s25, [#allocation6], %s616_s0, %s616_s0, %s617_s27  }
  0x34   :  { %s618_s14 = smov [#allocation8]   ;;  %s561_s18 = scalar_lea.hbm %s759_s5, 1024 }
  0x35   :  { %s57_s15 = sshll.u32 %s618_s14, 4  ;;  %p562_p10 = scmp.ne.s32.totalorder %s759_s5, %s561_s18  ;;  %s58_s15 = int_to_ptr.vmem [resolvable:$true] %s57_s15 }
  0x36   :  { %p565_p11 = scmp.lt.u32.totalorder %s561_s18, %s759_s5 }
  0x38   :  { %p567_p12 = pnand %p565_p11, %p562_p10 }
  0x3a   :  { %570 = shalt.err (!%p567_p12)
}
  0x3b   :  { %s571_s1 = scalar_lea.vmem %s58_s15, 1024  ;;  %p576_p0 = scmp.lt.s32.totalorder %s58_s15, %s58_s15 }
  0x3c   :  { %p572_p13 = scmp.ne.s32.totalorder %s58_s15, %s571_s1  ;;  %p577_p1 = scmp.lt.s32.totalorder %s571_s1, %s571_s1 }
  0x3e   :  { %p578_p2 = por %p577_p1, %p576_p0 }
  0x40   :  { %p579_p3 = pnand %p578_p2, %p572_p13 }
  0x42   :  { %582 = shalt.err (!%p579_p3)
}
  0x43   :  { %63 = dma.hbm_to_vmem [thread:$0]  %s759_s5, 1024, %s58_s15, [#allocation9], %s616_s0, %s616_s0, %s617_s27  }
  0x44   :  { %605 = dma.done.wait [#allocation3], 64  }
  0x45   :  { %606 = vsyncadd [#allocation3], 4294967232 }
  0x46   :  { %607 = dma.done.wait [#allocation6], 1088  }
  0x47   :  { %608 = vsyncadd [#allocation6], 4294966208 }
  0x48   :  { %609 = dma.done.wait [#allocation9], 1024  }
  0x49   :  { %610 = vsyncadd [#allocation9], 4294966272  ;;  %v619_v0 = vmov 0.0   ;;  %vm620_vm0 = vmmov 0   ;;  %vm92_vm1 = vcmask 1043456   ;;  %vm88_vm2 = vcmask 64512  }
  0x4a   :  { %420 = vmatprep.subr.bf16.mxu0 %v619_v0  ;;  %422 = vmatprep.mubr.msk.bf16.mxu0 %vm620_vm0, %v619_v0  ;;  %v80_v1 = vld [vmem:[#allocation5] sm:$0xf]  ;;  %v475_v3 = vld [vmem:[#allocation7] sm:$0xff]   ;;  %v79_v4 = vld [vmem:[#allocation2] sm:$0xf]  ;;  %s621_s29 = smov [#allocation10]  }
  0x4b   :  { %426 = vmatprep.subr.bf16.mxu1 %v619_v0  ;;  %442 = vmatprep.mubr.msk.bf16.mxu1 %vm620_vm0, %v619_v0  ;;  %v94_v2 = vsel %vm92_vm1, %v80_v1, 0  ;;  %v476_v5 = vld [vmem:[#allocation7 + $0x8] sm:$0xff]   ;;  %v477_v6 = vld [vmem:[#allocation7 + $0x10] sm:$0xff]   ;;  %v478_v7 = vld [vmem:[#allocation7 + $0x18] sm:$0xff]   ;;  %s369_s30 = sshll.u32 %s621_s29, 4  ;;  %s370_s30 = int_to_ptr.vmem [resolvable:$true] %s369_s30 }
  0x4c   :  { %421 = vmatpush3.bf16.msra.mxu0 %v94_v2  ;;  %427 = vmatpush3.bf16.msra.mxu1 %v475_v3  ;;  %v479_v8 = vld [vmem:[#allocation7 + $0x20] sm:$0xff]   ;;  %v480_v9 = vld [vmem:[#allocation7 + $0x28] sm:$0xff]   ;;  %v481_v10 = vld [vmem:[#allocation7 + $0x30] sm:$0xff]   ;;  %p588_p5 = scmp.lt.s32.totalorder %s370_s30, %s370_s30 }
  0x4d   :  { %446 = vmatprep.subr.bf16.mxu0 %v619_v0  ;;  %428 = vmatprep.subr.bf16.mxu1 %v619_v0  ;;  %v482_v11 = vld [vmem:[#allocation7 + $0x38] sm:$0xff]   ;;  %v483_v12 = vld [vmem:[#allocation8] sm:$0xff]   ;;  %v484_v13 = vld [vmem:[#allocation8 + $0x8] sm:$0xff]  }
  0x4e   :  { %v485_v14 = vld [vmem:[#allocation8 + $0x10] sm:$0xff]   ;;  %v486_v15 = vld [vmem:[#allocation8 + $0x18] sm:$0xff]   ;;  %v487_v24 = vld [vmem:[#allocation8 + $0x20] sm:$0xff]  }
  0x4f   :  { %423 = vmatmul.mubr.msk.bf16.vlgmr.msra.gmra.mrb[0].mxu0 %vm88_vm2, %v79_v4  ;;  %v380_v16 = vld [vmem:[%s756_s2] ss:$0 sm:$0xff]  ;;  %v488_v25 = vld [vmem:[#allocation8 + $0x28] sm:$0xff]   ;;  %v489_v26 = vld [vmem:[#allocation8 + $0x30] sm:$0xff]  }
  0x50   :  { %462 = vmatprep.mubr.msk.bf16.mxu0 %vm620_vm0, %v619_v0  ;;  %429 = vmatpush3.bf16.msra.mxu1 %v476_v5  ;;  %v490_v27 = vld [vmem:[#allocation8 + $0x38] sm:$0xff]  }
  0x51   :  { %430 = vmatprep.subr.bf16.mxu1 %v619_v0  ;;  %447 = vmatpush3.bf16.msra.mxu0 %v483_v12  ;;  %v382_v28 = vld [vmem:[%s758_s4] ss:$0 sm:$0xff]  ;;  %s583_s4 = scalar_lea.vmem %s370_s30, 128 }
  0x52   :  { %448 = vmatprep.subr.bf16.mxu0 %v619_v0  ;;  %v391_v36 = vld [vmem:[%s760_s6] ss:$0 sm:$0xff]  ;;  %p584_p4 = scmp.ne.s32.totalorder %s370_s30, %s583_s4  ;;  %p589_p6 = scmp.lt.s32.totalorder %s583_s4, %s583_s4 }
  0x54   :  { %431 = vmatpush3.bf16.msra.mxu1 %v477_v6  ;;  %p590_p7 = por %p589_p6, %p588_p5 }
  0x55   :  { %432 = vmatprep.subr.bf16.mxu1 %v619_v0  ;;  %449 = vmatpush3.bf16.msra.mxu0 %v484_v13 }
  0x56   :  { %450 = vmatprep.subr.bf16.mxu0 %v619_v0  ;;  %p591_p8 = pnand %p590_p7, %p584_p4 }
  0x58   :  { %433 = vmatpush3.bf16.msra.mxu1 %v478_v7 }
  0x59   :  { %434 = vmatprep.subr.bf16.mxu1 %v619_v0  ;;  %451 = vmatpush3.bf16.msra.mxu0 %v485_v14 }
  0x5a   :  { %452 = vmatprep.subr.bf16.mxu0 %v619_v0 }
  0x5c   :  { %435 = vmatpush3.bf16.msra.mxu1 %v479_v8 }
  0x5d   :  { %436 = vmatprep.subr.bf16.mxu1 %v619_v0  ;;  %453 = vmatpush3.bf16.msra.mxu0 %v486_v15 }
  0x5e   :  { %454 = vmatprep.subr.bf16.mxu0 %v619_v0 }
  0x60   :  { %437 = vmatpush3.bf16.msra.mxu1 %v480_v9 }
  0x61   :  { %438 = vmatprep.subr.bf16.mxu1 %v619_v0  ;;  %455 = vmatpush3.bf16.msra.mxu0 %v487_v24 }
  0x62   :  { %456 = vmatprep.subr.bf16.mxu0 %v619_v0 }
  0x64   :  { %439 = vmatpush3.bf16.msra.mxu1 %v481_v10 }
  0x65   :  { %440 = vmatprep.subr.bf16.mxu1 %v619_v0  ;;  %457 = vmatpush3.bf16.msra.mxu0 %v488_v25 }
  0x66   :  { %458 = vmatprep.subr.bf16.mxu0 %v619_v0 }
  0x68   :  { %441 = vmatpush3.bf16.msra.mxu1 %v482_v11 }
  0x69   :  { %459 = vmatpush3.bf16.msra.mxu0 %v489_v26 }
  0x6a   :  { %460 = vmatprep.subr.bf16.mxu0 %v619_v0 }
  0x6d   :  { %461 = vmatpush3.bf16.msra.mxu0 %v490_v27 }
 0x122   :  { %v130_v17 = vpop.f32.mrb[0].mxu0 }
 0x123   :  { %v131_v18 = vadd.f32 %v380_v16, %v130_v17  ;;  %v424_v19 = vpop.f32.mrb[1].mxu0 }
 0x124   :  { %v133_v20 = vpop.f32.mrb[2].mxu0 }
 0x125   :  { %491 = vtanh.f32 %v131_v18  ;;  %v425_v21 = vpop.f32.mrb[3].mxu0 }
 0x12f   :  { %v492_v22 = vpop.eup %491 }
 0x130   :  { %v137_v23 = vpack.c.bf16 %v492_v22, %v492_v22 }
 0x132   :  { %443 = vmatmul.mubr.bf16.vlgmr.msra.gmra.mrb[0].mxu1 %v137_v23 }
 0x205   :  { %v243_v29 = vpop.f32.mrb[0].mxu1 }
 0x206   :  { %v244_v30 = vadd.f32 %v382_v28, %v243_v29  ;;  %v444_v31 = vpop.f32.mrb[1].mxu1 }
 0x207   :  { %v246_v32 = vpop.f32.mrb[2].mxu1 }
 0x208   :  { %493 = vtanh.f32 %v244_v30  ;;  %v445_v33 = vpop.f32.mrb[3].mxu1 }
 0x212   :  { %v494_v34 = vpop.eup %493 }
 0x213   :  { %v250_v35 = vpack.c.bf16 %v494_v34, %v494_v34 }
 0x215   :  { %463 = vmatmul.mubr.bf16.vlgmr.msra.gmra.mrb[4].mxu0 %v250_v35 }
 0x2e8   :  { %v356_v37 = vpop.f32.mrb[4].mxu0 }
 0x2e9   :  { %v357_v38 = vadd.f32 %v391_v36, %v356_v37  ;;  %v464_v39 = vpop.f32.mrb[5].mxu0 }
 0x2ea   :  { %v359_v40 = vpop.f32.mrb[6].mxu0 }
 0x2eb   :  { %362 = vst [vmem:[#allocation10] sm:$0xff] %v357_v38  ;;  %v465_v41 = vpop.f32.mrb[7].mxu0 }
 0x2ec   :  { %594 = shalt.err (!%p591_p8)
}
 0x2ed   :  { %s595_s6 = scalar_lea.hbm %s761_s7, 128 }
 0x2ee   :  { %p596_p9 = scmp.ne.s32.totalorder %s761_s7, %s595_s6  ;;  %p599_p10 = scmp.lt.u32.totalorder %s595_s6, %s761_s7 }
 0x2f0   :  { %p601_p11 = pnand %p599_p10, %p596_p9 }
 0x2f2   :  { %604 = shalt.err (!%p601_p11)
}
 0x2f3   :  { %372 = dma.vmem_to_hbm [thread:$0]  %s370_s30, 128, %s761_s7, [#allocation4]  }
 0x2f4   :  { %611 = dma.done.wait [#allocation4], 128  }
 0x2f5   :  { %612 = vsyncadd [#allocation4], 4294967168 }
 0x2f6   :  { %376 = vsyncpa [#allocation3], 1 }
 0x2f7   :  { %377 = vsyncpa [#allocation6], 1 }
 0x2f8   :  { %378 = vsyncpa [#allocation9], 1 }
 0x2f9   :  { %379 = vsyncpa [#allocation4], 1 }

// kernel: tpu_custom_call.1
= control target key start
LH: loop header
LB: loop body
LE: loop exit
PB: predicated region body
PF: predicated region fallthrough
CT: control target
= control target key end

     0   :  { %12 = vsyncpa [#allocation3], 0  ;;  %s754_s0 = inlined_call_operand.hbm [shape: bf16[8,8], index: 0, kind: input, shape index: {}]   ;;  %s755_s1 = inlined_call_operand.hbm [shape: bf16[8,128], index: 1, kind: input, shape index: {}]   ;;  %s756_s2 = inlined_call_operand.vmem [shape: f32[1,128], index: 2, kind: input, shape index: {}]   ;;  %s757_s3 = inlined_call_operand.hbm [shape: bf16[128,128], index: 3, kind: input, shape index: {}]   ;;  %s758_s4 = inlined_call_operand.vmem [shape: f32[1,128], index: 4, kind: input, shape index: {}]   ;;  %s759_s5 = inlined_call_operand.hbm [shape: bf16[128,128], index: 5, kind: input, shape index: {}]   ;;  %s760_s6 = inlined_call_operand.vmem [shape: f32[1,128], index: 6, kind: input, shape index: {}]   ;;  %s761_s7 = inlined_call_operand.hbm [shape: f32[8,128], index: 7, kind: output, shape index: {}]  }
   0x1   :  { %13 = vsyncpa [#allocation6], 0 }
   0x2   :  { %14 = vsyncpa [#allocation9], 0 }
   0x3   :  { %15 = vsyncpa [#allocation4], 0  ;;  %s613_s24 = smov [#allocation5]   ;;  %s614_s26 = smov [#allocation2]  }
   0x4   :  { %s32_s25 = sshll.u32 %s613_s24, 4  ;;  %s22_s27 = sshll.u32 %s614_s26, 4  ;;  %s33_s25 = int_to_ptr.vmem [resolvable:$true] %s32_s25  ;;  %s23_s27 = int_to_ptr.vmem [resolvable:$true] %s22_s27 }
   0x5   :  { %s495_s30 = scalar_lea.hbm %s755_s1, 64 }
   0x6   :  { %p496_p0 = scmp.ne.s32.totalorder %s755_s1, %s495_s30  ;;  %p499_p1 = scmp.lt.u32.totalorder %s495_s30, %s755_s1 }
   0x8   :  { %p501_p2 = pnand %p499_p1, %p496_p0 }
   0xa   :  { %504 = shalt.err (!%p501_p2)
}
   0xb   :  { %s505_s12 = scalar_lea.vmem %s33_s25, 64  ;;  %p510_p4 = scmp.lt.s32.totalorder %s33_s25, %s33_s25 }
   0xc   :  { %p506_p3 = scmp.ne.s32.totalorder %s33_s25, %s505_s12  ;;  %p511_p5 = scmp.lt.s32.totalorder %s505_s12, %s505_s12 }
   0xe   :  { %p512_p6 = por %p511_p5, %p510_p4 }
  0x10   :  { %p513_p7 = pnand %p512_p6, %p506_p3 }
  0x12   :  { %516 = shalt.err (!%p513_p7)
}
  0x13   :  { %35 = dma.hbm_to_vmem [thread:$0]  %s755_s1, 64, %s33_s25, [#allocation6]  }
  0x14   :  { %s517_s17 = scalar_lea.hbm %s754_s0, 64 }
  0x15   :  { %p518_p8 = scmp.ne.s32.totalorder %s754_s0, %s517_s17  ;;  %p521_p9 = scmp.lt.u32.totalorder %s517_s17, %s754_s0 }
  0x17   :  { %p523_p10 = pnand %p521_p9, %p518_p8 }
  0x19   :  { %526 = shalt.err (!%p523_p10)
}
  0x1a   :  { %s527_s22 = scalar_lea.vmem %s23_s27, 64  ;;  %p532_p12 = scmp.lt.s32.totalorder %s23_s27, %s23_s27 }
  0x1b   :  { %p528_p11 = scmp.ne.s32.totalorder %s23_s27, %s527_s22  ;;  %p533_p13 = scmp.lt.s32.totalorder %s527_s22, %s527_s22 }
  0x1d   :  { %p534_p0 = por %p533_p13, %p532_p12 }
  0x1f   :  { %p535_p1 = pnand %p534_p0, %p528_p11 }
  0x21   :  { %538 = shalt.err (!%p535_p1)
}
  0x22   :  { %25 = dma.hbm_to_vmem [thread:$0]  %s754_s0, 64, %s23_s27, [#allocation3]  }
  0x23   :  { %s615_s24 = smov [#allocation7]   ;;  %s539_s29 = scalar_lea.hbm %s757_s3, 1024 }
  0x24   :  { %s43_s25 = sshll.u32 %s615_s24, 4  ;;  %p540_p2 = scmp.ne.s32.totalorder %s757_s3, %s539_s29  ;;  %s44_s25 = int_to_ptr.vmem [resolvable:$true] %s43_s25 }
  0x25   :  { %p543_p3 = scmp.lt.u32.totalorder %s539_s29, %s757_s3 }
  0x27   :  { %p545_p4 = pnand %p543_p3, %p540_p2 }
  0x29   :  { %548 = shalt.err (!%p545_p4)
}
  0x2a   :  { %s549_s11 = scalar_lea.vmem %s44_s25, 1024  ;;  %p554_p6 = scmp.lt.s32.totalorder %s44_s25, %s44_s25 }
  0x2b   :  { %p550_p5 = scmp.ne.s32.totalorder %s44_s25, %s549_s11  ;;  %p555_p7 = scmp.lt.s32.totalorder %s549_s11, %s549_s11 }
  0x2d   :  { %p556_p8 = por %p555_p7, %p554_p6 }
  0x2f   :  { %p557_p9 = pnand %p556_p8, %p550_p5 }
  0x31   :  { %560 = shalt.err (!%p557_p9)
}
  0x32   :  { %s616_s0 = smov 64   ;;  %s617_s27 = smov 4  }
  0x33   :  { %49 = dma.hbm_to_vmem [thread:$0]  %s757_s3, 1024, %s44_s25, [#allocation6], %s616_s0, %s616_s0, %s617_s27  }
  0x34   :  { %s618_s14 = smov [#allocation8]   ;;  %s561_s18 = scalar_lea.hbm %s759_s5, 1024 }
  0x35   :  { %s57_s15 = sshll.u32 %s618_s14, 4  ;;  %p562_p10 = scmp.ne.s32.totalorder %s759_s5, %s561_s18  ;;  %s58_s15 = int_to_ptr.vmem [resolvable:$true] %s57_s15 }
  0x36   :  { %p565_p11 = scmp.lt.u32.totalorder %s561_s18, %s759_s5 }
  0x38   :  { %p567_p12 = pnand %p565_p11, %p562_p10 }
  0x3a   :  { %570 = shalt.err (!%p567_p12)
}
  0x3b   :  { %s571_s1 = scalar_lea.vmem %s58_s15, 1024  ;;  %p576_p0 = scmp.lt.s32.totalorder %s58_s15, %s58_s15 }
  0x3c   :  { %p572_p13 = scmp.ne.s32.totalorder %s58_s15, %s571_s1  ;;  %p577_p1 = scmp.lt.s32.totalorder %s571_s1, %s571_s1 }
  0x3e   :  { %p578_p2 = por %p577_p1, %p576_p0 }
  0x40   :  { %p579_p3 = pnand %p578_p2, %p572_p13 }
  0x42   :  { %582 = shalt.err (!%p579_p3)
}
  0x43   :  { %63 = dma.hbm_to_vmem [thread:$0]  %s759_s5, 1024, %s58_s15, [#allocation9], %s616_s0, %s616_s0, %s617_s27  }
  0x44   :  { %605 = dma.done.wait [#allocation3], 64  }
  0x45   :  { %606 = vsyncadd [#allocation3], 4294967232 }
  0x46   :  { %607 = dma.done.wait [#allocation6], 1088  }
  0x47   :  { %608 = vsyncadd [#allocation6], 4294966208 }
  0x48   :  { %609 = dma.done.wait [#allocation9], 1024  }
  0x49   :  { %610 = vsyncadd [#allocation9], 4294966272  ;;  %v619_v0 = vmov 0.0   ;;  %vm620_vm0 = vmmov 0   ;;  %vm92_vm1 = vcmask 1043456   ;;  %vm88_vm2 = vcmask 64512  }
  0x4a   :  { %420 = vmatprep.subr.bf16.mxu0 %v619_v0  ;;  %422 = vmatprep.mubr.msk.bf16.mxu0 %vm620_vm0, %v619_v0  ;;  %v80_v1 = vld [vmem:[#allocation5] sm:$0xf]  ;;  %v475_v3 = vld [vmem:[#allocation7] sm:$0xff]   ;;  %v79_v4 = vld [vmem:[#allocation2] sm:$0xf]  ;;  %s621_s29 = smov [#allocation10]  }
  0x4b   :  { %426 = vmatprep.subr.bf16.mxu1 %v619_v0  ;;  %442 = vmatprep.mubr.msk.bf16.mxu1 %vm620_vm0, %v619_v0  ;;  %v94_v2 = vsel %vm92_vm1, %v80_v1, 0  ;;  %v476_v5 = vld [vmem:[#allocation7 + $0x8] sm:$0xff]   ;;  %v477_v6 = vld [vmem:[#allocation7 + $0x10] sm:$0xff]   ;;  %v478_v7 = vld [vmem:[#allocation7 + $0x18] sm:$0xff]   ;;  %s369_s30 = sshll.u32 %s621_s29, 4  ;;  %s370_s30 = int_to_ptr.vmem [resolvable:$true] %s369_s30 }
  0x4c   :  { %421 = vmatpush3.bf16.msra.mxu0 %v94_v2  ;;  %427 = vmatpush3.bf16.msra.mxu1 %v475_v3  ;;  %v479_v8 = vld [vmem:[#allocation7 + $0x20] sm:$0xff]   ;;  %v480_v9 = vld [vmem:[#allocation7 + $0x28] sm:$0xff]   ;;  %v481_v10 = vld [vmem:[#allocation7 + $0x30] sm:$0xff]   ;;  %p588_p5 = scmp.lt.s32.totalorder %s370_s30, %s370_s30 }
  0x4d   :  { %446 = vmatprep.subr.bf16.mxu0 %v619_v0  ;;  %428 = vmatprep.subr.bf16.mxu1 %v619_v0  ;;  %v482_v11 = vld [vmem:[#allocation7 + $0x38] sm:$0xff]   ;;  %v483_v12 = vld [vmem:[#allocation8] sm:$0xff]   ;;  %v484_v13 = vld [vmem:[#allocation8 + $0x8] sm:$0xff]  }
  0x4e   :  { %v485_v14 = vld [vmem:[#allocation8 + $0x10] sm:$0xff]   ;;  %v486_v15 = vld [vmem:[#allocation8 + $0x18] sm:$0xff]   ;;  %v487_v24 = vld [vmem:[#allocation8 + $0x20] sm:$0xff]  }
  0x4f   :  { %423 = vmatmul.mubr.msk.bf16.vlgmr.msra.gmra.mrb[0].mxu0 %vm88_vm2, %v79_v4  ;;  %v380_v16 = vld [vmem:[%s756_s2] ss:$0 sm:$0xff]  ;;  %v488_v25 = vld [vmem:[#allocation8 + $0x28] sm:$0xff]   ;;  %v489_v26 = vld [vmem:[#allocation8 + $0x30] sm:$0xff]  }
  0x50   :  { %462 = vmatprep.mubr.msk.bf16.mxu0 %vm620_vm0, %v619_v0  ;;  %429 = vmatpush3.bf16.msra.mxu1 %v476_v5  ;;  %v490_v27 = vld [vmem:[#allocation8 + $0x38] sm:$0xff]  }
  0x51   :  { %430 = vmatprep.subr.bf16.mxu1 %v619_v0  ;;  %447 = vmatpush3.bf16.msra.mxu0 %v483_v12  ;;  %v382_v28 = vld [vmem:[%s758_s4] ss:$0 sm:$0xff]  ;;  %s583_s4 = scalar_lea.vmem %s370_s30, 128 }
  0x52   :  { %448 = vmatprep.subr.bf16.mxu0 %v619_v0  ;;  %v391_v36 = vld [vmem:[%s760_s6] ss:$0 sm:$0xff]  ;;  %p584_p4 = scmp.ne.s32.totalorder %s370_s30, %s583_s4  ;;  %p589_p6 = scmp.lt.s32.totalorder %s583_s4, %s583_s4 }
  0x54   :  { %431 = vmatpush3.bf16.msra.mxu1 %v477_v6  ;;  %p590_p7 = por %p589_p6, %p588_p5 }
  0x55   :  { %432 = vmatprep.subr.bf16.mxu1 %v619_v0  ;;  %449 = vmatpush3.bf16.msra.mxu0 %v484_v13 }
  0x56   :  { %450 = vmatprep.subr.bf16.mxu0 %v619_v0  ;;  %p591_p8 = pnand %p590_p7, %p584_p4 }
  0x58   :  { %433 = vmatpush3.bf16.msra.mxu1 %v478_v7 }
  0x59   :  { %434 = vmatprep.subr.bf16.mxu1 %v619_v0  ;;  %451 = vmatpush3.bf16.msra.mxu0 %v485_v14 }
  0x5a   :  { %452 = vmatprep.subr.bf16.mxu0 %v619_v0 }
  0x5c   :  { %435 = vmatpush3.bf16.msra.mxu1 %v479_v8 }
  0x5d   :  { %436 = vmatprep.subr.bf16.mxu1 %v619_v0  ;;  %453 = vmatpush3.bf16.msra.mxu0 %v486_v15 }
  0x5e   :  { %454 = vmatprep.subr.bf16.mxu0 %v619_v0 }
  0x60   :  { %437 = vmatpush3.bf16.msra.mxu1 %v480_v9 }
  0x61   :  { %438 = vmatprep.subr.bf16.mxu1 %v619_v0  ;;  %455 = vmatpush3.bf16.msra.mxu0 %v487_v24 }
  0x62   :  { %456 = vmatprep.subr.bf16.mxu0 %v619_v0 }
  0x64   :  { %439 = vmatpush3.bf16.msra.mxu1 %v481_v10 }
  0x65   :  { %440 = vmatprep.subr.bf16.mxu1 %v619_v0  ;;  %457 = vmatpush3.bf16.msra.mxu0 %v488_v25 }
  0x66   :  { %458 = vmatprep.subr.bf16.mxu0 %v619_v0 }
  0x68   :  { %441 = vmatpush3.bf16.msra.mxu1 %v482_v11 }
  0x69   :  { %459 = vmatpush3.bf16.msra.mxu0 %v489_v26 }
  0x6a   :  { %460 = vmatprep.subr.bf16.mxu0 %v619_v0 }
  0x6d   :  { %461 = vmatpush3.bf16.msra.mxu0 %v490_v27 }
 0x122   :  { %v130_v17 = vpop.f32.mrb[0].mxu0 }
 0x123   :  { %v131_v18 = vadd.f32 %v380_v16, %v130_v17  ;;  %v424_v19 = vpop.f32.mrb[1].mxu0 }
 0x124   :  { %v133_v20 = vpop.f32.mrb[2].mxu0 }
 0x125   :  { %491 = vtanh.f32 %v131_v18  ;;  %v425_v21 = vpop.f32.mrb[3].mxu0 }
 0x12f   :  { %v492_v22 = vpop.eup %491 }
 0x130   :  { %v137_v23 = vpack.c.bf16 %v492_v22, %v492_v22 }
 0x132   :  { %443 = vmatmul.mubr.bf16.vlgmr.msra.gmra.mrb[0].mxu1 %v137_v23 }
 0x205   :  { %v243_v29 = vpop.f32.mrb[0].mxu1 }
 0x206   :  { %v244_v30 = vadd.f32 %v382_v28, %v243_v29  ;;  %v444_v31 = vpop.f32.mrb[1].mxu1 }
 0x207   :  { %v246_v32 = vpop.f32.mrb[2].mxu1 }
 0x208   :  { %493 = vtanh.f32 %v244_v30  ;;  %v445_v33 = vpop.f32.mrb[3].mxu1 }
 0x212   :  { %v494_v34 = vpop.eup %493 }
 0x213   :  { %v250_v35 = vpack.c.bf16 %v494_v34, %v494_v34 }
 0x215   :  { %463 = vmatmul.mubr.bf16.vlgmr.msra.gmra.mrb[4].mxu0 %v250_v35 }
 0x2e8   :  { %v356_v37 = vpop.f32.mrb[4].mxu0 }
 0x2e9   :  { %v357_v38 = vadd.f32 %v391_v36, %v356_v37  ;;  %v464_v39 = vpop.f32.mrb[5].mxu0 }
 0x2ea   :  { %v359_v40 = vpop.f32.mrb[6].mxu0 }
 0x2eb   :  { %362 = vst [vmem:[#allocation10] sm:$0xff] %v357_v38  ;;  %v465_v41 = vpop.f32.mrb[7].mxu0 }
 0x2ec   :  { %594 = shalt.err (!%p591_p8)
}
 0x2ed   :  { %s595_s6 = scalar_lea.hbm %s761_s7, 128 }
 0x2ee   :  { %p596_p9 = scmp.ne.s32.totalorder %s761_s7, %s595_s6  ;;  %p599_p10 = scmp.lt.u32.totalorder %s595_s6, %s761_s7 }
 0x2f0   :  { %p601_p11 = pnand %p599_p10, %p596_p9 }
 0x2f2   :  { %604 = shalt.err (!%p601_p11)
}
 0x2f3   :  { %372 = dma.vmem_to_hbm [thread:$0]  %s370_s30, 128, %s761_s7, [#allocation4]  }
 0x2f4   :  { %611 = dma.done.wait [#allocation4], 128  }
 0x2f5   :  { %612 = vsyncadd [#allocation4], 4294967168 }
 0x2f6   :  { %376 = vsyncpa [#allocation3], 1 }
 0x2f7   :  { %377 = vsyncpa [#allocation6], 1 }
 0x2f8   :  { %378 = vsyncpa [#allocation9], 1 }
 0x2f9   :  { %379 = vsyncpa [#allocation4], 1 }

</bundles_post_ra>
